<compile_context>
chip_gen: v5e
topology: v5e:2x2
jax: 0.10.0
libtpu: 0.0.40
codegen_flags: <defaults>
</compile_context>

<pallas_src>
import functools

import jax
import jax.numpy as jnp
from jax.experimental import pallas as pl
from jax.experimental.pallas import tpu as pltpu


# ----------------------------- Pallas kernel ------------------------------ #
def _backbone_kernel(x_ref, w1_ref, b1_ref, w2_ref, b2_ref, pool_ref, o_ref):
    """One block of Bblk images per grid step.

    x_ref   : (Bblk*HP, P*W*Cin)   raw pixels [0,255], row-group layout
    w1_ref  : (P*W*Cin, WP*2C)     patch-embed weight, [orig||flip] per patch
    b1_ref  : (1, WP*2C)           patch-embed bias (tiled per patch column)
    w2_ref  : (WP*2C, Fp)          head weight (GAP-over-WP and 0.5 flip-avg
                                   folded in, zero-padded to Fp lanes)
    b2_ref  : (1, Fp)              head bias (zero-padded)
    pool_ref: (Bblk, Bblk*HP)      GAP-over-row-groups matrix (entries 1/HP)
    o_ref   : (Bblk, Fp)           output features (lane-dense)
    """
    # toTensor(): cast + normalization, fused (VPU, f32)
    x = x_ref[...].astype(jnp.float32)
    x = (x - 127.5) * (1.0 / 128.0)

    # patch-embedding "conv" for orig + flipped image in one MXU matmul
    h = jnp.dot(x, w1_ref[...], preferred_element_type=jnp.float32)
    h = jnp.maximum(h + b1_ref[...], 0.0)                 # (Bblk*HP, WP*2C)

    # linear head applied per row (GAP over patch columns folded into w2)
    g = jnp.dot(h, w2_ref[...], preferred_element_type=jnp.float32)

    # GAP over the HP row-groups of each image as a tiny MXU matmul
    feat = jnp.dot(pool_ref[...], g, preferred_element_type=jnp.float32)

    o_ref[...] = (feat + b2_ref[...]).astype(o_ref.dtype)  # (Bblk, Fp)


# ------------------------------ JAX wrapper ------------------------------- #
@functools.partial(jax.jit, static_argnames=("patch", "block_b"))
def regressor_forward(imgs, w1, b1, w2, b2, patch=4, block_b=8):
    """Regressor.forward (mean=True, concat=False, train=False).

    imgs: (N, H, W, Cin) NHWC, range [0, 255] (any float/int dtype; the
          toTensor cast + normalization happen inside the kernel).
    w1:   (P*P*Cin, C) patch-embed weight, k ordered (pr, pc, c)
    b1:   (1, C)       patch-embed bias
    w2:   (C, F)       head weight
    b2:   (1, F)       head bias
    Returns: (N, F) features.
    """
    N, H, W, C_in = imgs.shape
    P = patch
    HP, WP = H // P, W // P
    C = w1.shape[1]
    F = w2.shape[1]
    Fp = ((F + 127) // 128) * 128       # lane-dense output width
    Kbig = P * W * C_in                 # row-group width (no transpose needed)
    N2C = WP * 2 * C

    # --- fold flip + patch-layout permutation into the weights (once) -------
    # Width flip == reverse of patch columns (pc -> P-1-pc) plus a patch
    # permutation which the global average pool ignores.
    w1_flip = w1.reshape(P, P, C_in, C)[:, ::-1, :, :].reshape(P * P * C_in, C)
    w1_both = jnp.concatenate([w1, w1_flip], axis=1)            # (K, 2C)

    # Scatter w1_both into the "no-transpose" row-group layout:
    #   row j = (pr, wb, pc, c), column (wp, c'); nonzero iff wb == wp.
    w1b = w1_both.reshape(P, P, C_in, 2 * C)
    eye_wp = jnp.eye(WP, dtype=w1.dtype)
    w_big = (w1b[:, None, :, :, None, :] *
             eye_wp[None, :, None, None, :, None]).reshape(Kbig, N2C)
    b_big = jnp.tile(jnp.concatenate([b1, b1], axis=1), (1, WP))  # (1, WP*2C)

    # Head: fold GAP-over-WP (1/WP) and the 0.5 flip-average into the weight;
    # zero-pad the output lane dim to Fp for unmasked stores.
    w2_stacked = 0.5 * jnp.concatenate([w2, w2], axis=0)          # (2C, F)
    w2_big = jnp.tile(w2_stacked, (WP, 1)) * (1.0 / WP)           # (WP*2C, F)
    w2_big = jnp.pad(w2_big, ((0, 0), (0, Fp - F)))
    b2_p = jnp.pad(b2, ((0, 0), (0, Fp - F)))                     # (1, Fp)

    # GAP over the HP row-groups of each image.
    pool_mat = jnp.repeat(jnp.eye(block_b, dtype=jnp.float32), HP, axis=1) / HP

    # --- images: contiguous reshape only (no cast / concat / transpose) -----
    x = imgs.reshape(N * HP, Kbig)
    Bpad = ((N + block_b - 1) // block_b) * block_b
    if Bpad != N:
        x = jnp.pad(x, ((0, (Bpad - N) * HP), (0, 0)))

    rows = block_b * HP
    feats = pl.pallas_call(
        _backbone_kernel,
        out_shape=jax.ShapeDtypeStruct((Bpad, Fp), jnp.float32),
        grid=(Bpad // block_b,),
        in_specs=[
            pl.BlockSpec((rows, Kbig), lambda i: (i, 0)),
            pl.BlockSpec((Kbig, N2C), lambda i: (0, 0)),
            pl.BlockSpec((1, N2C), lambda i: (0, 0)),
            pl.BlockSpec((N2C, Fp), lambda i: (0, 0)),
            pl.BlockSpec((1, Fp), lambda i: (0, 0)),
            pl.BlockSpec((block_b, rows), lambda i: (0, 0)),
        ],
        out_specs=pl.BlockSpec((block_b, Fp), lambda i: (i, 0)),
        compiler_params=pltpu.CompilerParams(
            dimension_semantics=("parallel",)),
    )(x, w_big, b_big, w2_big, b2_p, pool_mat)

    return feats[:N, :F]


# --------------------------------- main ----------------------------------- #
if __name__ == "__main__":
    key = jax.random.PRNGKey(0)
    k_img, k_w1, k_b1, k_w2, k_b2 = jax.random.split(key, 5)

    # Small shapes consistent with the module's image interface.
    N, H, W, C_IN = 16, 16, 16, 3
    PATCH = 4
    HIDDEN = 64           # surrogate backbone width (2*HIDDEN = 128 lanes)
    FEATURE_DIM = 64      # feature_dim of create_model
    BLOCK_B = 8           # images per grid step -> 2 parallel grid steps

    K = PATCH * PATCH * C_IN          # 48
    T = (H // PATCH) * (W // PATCH)   # 16

    # Deterministic synthetic parameters (no checkpoint load).
    w1 = jax.random.normal(k_w1, (K, HIDDEN), jnp.float32) * 0.05
    b1 = jax.random.normal(k_b1, (1, HIDDEN), jnp.float32) * 0.01
    w2 = jax.random.normal(k_w2, (HIDDEN, FEATURE_DIM), jnp.float32) * 0.05
    b2 = jax.random.normal(k_b2, (1, FEATURE_DIM), jnp.float32) * 0.01

    # Raw resized images, range [0, 255], NHWC.  Integer pixel values stored
    # as bf16 (lossless for 0..255) -> half the image HBM bytes into the
    # kernel; the kernel does the f32 cast + normalization.
    imgs_int = jax.random.randint(k_img, (N, H, W, C_IN), 0, 256)
    imgs = imgs_int.astype(jnp.bfloat16)

    feats = regressor_forward(imgs, w1, b1, w2, b2, patch=PATCH,
                              block_b=BLOCK_B)
    feats = jax.block_until_ready(feats)

    # Reference check in plain JAX (straightforward flip_inference math).
    def ref_forward(imgs_f32):
        x_all = jnp.concatenate([imgs_f32, imgs_f32[:, :, ::-1, :]], axis=0)
        B2 = x_all.shape[0]
        xp = x_all.reshape(B2, H // PATCH, PATCH, W // PATCH, PATCH, C_IN)
        xp = jnp.transpose(xp, (0, 1, 3, 2, 4, 5)).reshape(B2, T, K)
        xn = (xp - 127.5) / 128.0
        h = jnp.maximum(
            jnp.einsum("btk,kc->btc", xn, w1,
                       precision=jax.lax.Precision.HIGHEST) + b1[0], 0.0)
        pooled = jnp.mean(h, axis=1)
        f = jnp.dot(pooled, w2, precision=jax.lax.Precision.HIGHEST) + b2[0]
        return 0.5 * (f[:N] + f[N:])

    ref_feats = ref_forward(imgs.astype(jnp.float32))
    assert feats.shape == (N, FEATURE_DIM)
    assert bool(jnp.all(jnp.isfinite(feats)))
    assert jnp.allclose(feats, ref_feats, atol=2e-4, rtol=2e-4)

    print("KERNEL_OK")
</pallas_src>

<mosaic_0001>
module attributes {stable_mosaic.version = 11 : i64} {
  func.func @_backbone_kernel(%arg0: i32, %arg1: memref<32x192xbf16, #tpu.memory_space<vmem>>, %arg2: memref<192x512xf32, #tpu.memory_space<vmem>>, %arg3: memref<1x512xf32, #tpu.memory_space<vmem>>, %arg4: memref<512x128xf32, #tpu.memory_space<vmem>>, %arg5: memref<1x128xf32, #tpu.memory_space<vmem>>, %arg6: memref<8x32xf32, #tpu.memory_space<vmem>>, %arg7: memref<8x128xf32, #tpu.memory_space<vmem>>) attributes {dimension_semantics = [#tpu.dimension_semantics<parallel>], iteration_bounds = array<i64: 2>, scalar_prefetch = 0 : i64, scratch_operands = 0 : i64, tpu.core_type = #tpu.core_type<tc>, window_params = [{transform_indices = @transform_0, window_bounds = array<i64: 32, 192>}, {pipeline_mode = #tpu.pipeline_mode<synchronous>, transform_indices = @transform_1, window_bounds = array<i64: 192, 512>}, {pipeline_mode = #tpu.pipeline_mode<synchronous>, transform_indices = @transform_2, window_bounds = array<i64: 1, 512>}, {pipeline_mode = #tpu.pipeline_mode<synchronous>, transform_indices = @transform_3, window_bounds = array<i64: 512, 128>}, {pipeline_mode = #tpu.pipeline_mode<synchronous>, transform_indices = @transform_4, window_bounds = array<i64: 1, 128>}, {pipeline_mode = #tpu.pipeline_mode<synchronous>, transform_indices = @transform_5, window_bounds = array<i64: 8, 32>}, {transform_indices = @transform_6, window_bounds = array<i64: 8, 128>}]} {
    %c0 = arith.constant 0 : index
    %c0_0 = arith.constant 0 : index
    %0 = vector.load %arg1[%c0, %c0_0] : memref<32x192xbf16, #tpu.memory_space<vmem>>, vector<32x192xbf16>
    %1 = arith.extf %0 : vector<32x192xbf16> to vector<32x192xf32>
    %cst = arith.constant 1.275000e+02 : f32
    %2 = vector.broadcast %cst : f32 to vector<32x192xf32>
    %3 = arith.subf %1, %2 : vector<32x192xf32>
    %cst_1 = arith.constant 7.812500e-03 : f32
    %4 = vector.broadcast %cst_1 : f32 to vector<32x192xf32>
    %5 = arith.mulf %3, %4 : vector<32x192xf32>
    %c0_2 = arith.constant 0 : index
    %c0_3 = arith.constant 0 : index
    %6 = vector.load %arg2[%c0_2, %c0_3] : memref<192x512xf32, #tpu.memory_space<vmem>>, vector<192x512xf32>
    %cst_4 = arith.constant dense<0.000000e+00> : vector<32x512xf32>
    %7 = tpu.matmul %5, %6, %cst_4 {dimension_numbers = #tpu.dot_dimension_numbers<[1], [0], [0], [1], [0, 0, 1, 1], [], []>} : vector<32x192xf32>, vector<192x512xf32>, vector<32x512xf32> -> vector<32x512xf32>
    %c0_5 = arith.constant 0 : index
    %c0_6 = arith.constant 0 : index
    %8 = vector.load %arg3[%c0_5, %c0_6] : memref<1x512xf32, #tpu.memory_space<vmem>>, vector<1x512xf32>
    %9 = vector.broadcast %8 : vector<1x512xf32> to vector<32x512xf32>
    %10 = arith.addf %7, %9 : vector<32x512xf32>
    %cst_7 = arith.constant 0.000000e+00 : f32
    %11 = vector.broadcast %cst_7 : f32 to vector<32x512xf32>
    %12 = arith.maximumf %10, %11 : vector<32x512xf32>
    %c0_8 = arith.constant 0 : index
    %c0_9 = arith.constant 0 : index
    %13 = vector.load %arg4[%c0_8, %c0_9] : memref<512x128xf32, #tpu.memory_space<vmem>>, vector<512x128xf32>
    %cst_10 = arith.constant dense<0.000000e+00> : vector<32x128xf32>
    %14 = tpu.matmul %12, %13, %cst_10 {dimension_numbers = #tpu.dot_dimension_numbers<[1], [0], [0], [1], [0, 0, 1, 1], [], []>} : vector<32x512xf32>, vector<512x128xf32>, vector<32x128xf32> -> vector<32x128xf32>
    %c0_11 = arith.constant 0 : index
    %c0_12 = arith.constant 0 : index
    %15 = vector.load %arg6[%c0_11, %c0_12] : memref<8x32xf32, #tpu.memory_space<vmem>>, vector<8x32xf32>
    %cst_13 = arith.constant dense<0.000000e+00> : vector<8x128xf32>
    %16 = tpu.matmul %15, %14, %cst_13 {dimension_numbers = #tpu.dot_dimension_numbers<[1], [0], [0], [1], [0, 0, 1, 1], [], []>} : vector<8x32xf32>, vector<32x128xf32>, vector<8x128xf32> -> vector<8x128xf32>
    %c0_14 = arith.constant 0 : index
    %c0_15 = arith.constant 0 : index
    %17 = vector.load %arg5[%c0_14, %c0_15] : memref<1x128xf32, #tpu.memory_space<vmem>>, vector<1x128xf32>
    %18 = vector.broadcast %17 : vector<1x128xf32> to vector<8x128xf32>
    %19 = arith.addf %16, %18 : vector<8x128xf32>
    %c0_16 = arith.constant 0 : index
    %c0_17 = arith.constant 0 : index
    %20 = vector.load %arg7[%c0_16, %c0_17] : memref<8x128xf32, #tpu.memory_space<vmem>>, vector<8x128xf32>
    tpu.vector_store %arg7[%c0_16, %c0_17], %19 {strides = array<i32>} : memref<8x128xf32, #tpu.memory_space<vmem>>, vector<8x128xf32>,
    return
  }
  func.func @transform_0(%arg0: i32) -> (i32, i32) {
    %c0_i32 = arith.constant 0 : i32
    %c0_i32_0 = arith.constant 0 : i32
    return %arg0, %c0_i32 : i32, i32
  }
  func.func @transform_1(%arg0: i32) -> (i32, i32) {
    %c0_i32 = arith.constant 0 : i32
    %c0_i32_0 = arith.constant 0 : i32
    %c0_i32_1 = arith.constant 0 : i32
    return %c0_i32, %c0_i32_0 : i32, i32
  }
  func.func @transform_2(%arg0: i32) -> (i32, i32) {
    %c0_i32 = arith.constant 0 : i32
    %c0_i32_0 = arith.constant 0 : i32
    %c0_i32_1 = arith.constant 0 : i32
    return %c0_i32, %c0_i32_0 : i32, i32
  }
  func.func @transform_3(%arg0: i32) -> (i32, i32) {
    %c0_i32 = arith.constant 0 : i32
    %c0_i32_0 = arith.constant 0 : i32
    %c0_i32_1 = arith.constant 0 : i32
    return %c0_i32, %c0_i32_0 : i32, i32
  }
  func.func @transform_4(%arg0: i32) -> (i32, i32) {
    %c0_i32 = arith.constant 0 : i32
    %c0_i32_0 = arith.constant 0 : i32
    %c0_i32_1 = arith.constant 0 : i32
    return %c0_i32, %c0_i32_0 : i32, i32
  }
  func.func @transform_5(%arg0: i32) -> (i32, i32) {
    %c0_i32 = arith.constant 0 : i32
    %c0_i32_0 = arith.constant 0 : i32
    %c0_i32_1 = arith.constant 0 : i32
    return %c0_i32, %c0_i32_0 : i32, i32
  }
  func.func @transform_6(%arg0: i32) -> (i32, i32) {
    %c0_i32 = arith.constant 0 : i32
    %c0_i32_0 = arith.constant 0 : i32
    return %arg0, %c0_i32 : i32, i32
  }
}

</mosaic_0001>

<bundles_post_ra>
// kernel: regressor_forward.1
= control target key start
LH: loop header
LB: loop body
LE: loop exit
PB: predicated region body
PF: predicated region fallthrough
CT: control target
= control target key end

     0   :  { %11 = vsyncpa [#allocation3], 0  ;;  %s1771_s0 = inlined_call_operand.vmem [shape: bf16[64,192], index: 0, kind: input, shape index: {}]   ;;  %s1772_s1 = inlined_call_operand.vmem [shape: f32[192,512], index: 1, kind: input, shape index: {}]   ;;  %s1773_s2 = inlined_call_operand.vmem [shape: f32[1,512], index: 2, kind: input, shape index: {}]   ;;  %s1774_s3 = inlined_call_operand.vmem [shape: f32[512,128], index: 3, kind: input, shape index: {}]   ;;  %s1775_s4 = inlined_call_operand.vmem [shape: f32[1,128], index: 4, kind: input, shape index: {}]   ;;  %s1776_s5 = inlined_call_operand.vmem [shape: f32[8,32], index: 5, kind: input, shape index: {}]   ;;  %s1777_s6 = inlined_call_operand.hbm [shape: f32[16,128], index: 6, kind: output, shape index: {}]  }
   0x1   :  { %13 = vsyncpa [#allocation3 + $0x1], 0  ;;  %s1112_s21 = smov 0   ;;  %s1114_s22 = smov 0  }
   0x2   :  { %s1116_s23 = smov 0   ;;  %s1118_s24 = smov 0  }
   0x3 LB: > { %s1133_s25 = sadd.s32 4294967295, %s1075_s24   ;;  %s935_s26 = sadd.s32 4294967294, %s1075_s24   ;;  %s1075_s24 = sphi %s1118_s24, %s1783_s24   ;;  %s1071_s23 = sphi %s1116_s23, %s1782_s23   ;;  %s1067_s22 = sphi %s1114_s22, %s1781_s22   ;;  %s1063_s21 = sphi %s1112_s21, %s1780_s21  }
   0x4   : > { %s1137_s27 = sadd.s32 1, %s1075_s24   ;;  %s157_s28 = sadd.s32 1, %s1071_s23 }
   0x5   : > { %s154_s29 = ssub.s32 %s1075_s24, %s1137_s27  ;;  %p167_p0 = scmp.ne.s32.totalorder %s1071_s23, %s1067_s22 }
   0x6   : > { %p155_p1 = scmp.eq.s32.totalorder %s154_s29, 0  ;;  %p168_p2 = scmp.eq.s32.totalorder %s1133_s25, 1 }
   0x7   : > { %p173_p3 = scmp.ne.s32.totalorder %s1067_s22, %s1063_s21  ;;  %p174_p4 = scmp.eq.s32.totalorder %s935_s26, 1 }
   0x8   : > { %s1148_s30 = scalar_select %p155_p1, %s1071_s23, %s157_s28  }
   0x9   : > { %p1150_p5 = por %p168_p2, %p167_p0  ;;  %p1154_p6 = por %p174_p4, %p173_p3 }
   0xa   : > { %p938_p7 = scmp.ge.s32.totalorder %s1075_s24, 1  ;;  %p217_p8 = scmp.lt.s32.totalorder %s1075_s24, 3 }
   0xc   : > { %p218_p9 = pnand %p938_p7, %p217_p8 }
   0xd   : > { %s940_s15 = sshll.u32 (!%p218_p9), %s1133_s25, 2  ;;  %s969_s16 = sshll.u32 (!%p218_p9), %s1133_s25, 3 }
   0xe   : > { %221 = sbr.rel (%p218_p9) target bundleno = 517 (0x205), region = 44  ;;  %p249_p10 = scmp.lt.s32.totalorder (!%p218_p9), %s940_s15, 7 }
   0xf   : > { %s871_s19 = scalar_lea.hbm (!%p218_p9), %s1777_s6, %s969_s16  ;;  %s1033_s16 = scalar_lea.hbm (!%p218_p9), %s1777_s6, 16 }
  0x10   : > { %s875_s9 = sshll.u32 (!%p218_p9), %s871_s19, 4  ;;  %s876_s9 = int_to_ptr.hbm [resolvable:$true] %s875_s9 }
  0x11   : > { %s1027_s10 = sshra.s32 (!%p218_p9), %s876_s9, 4  ;;  %s1028_s10 = int_to_ptr.hbm [resolvable:$true] %s1027_s10 }
  0x12   : > { %s1029_s25 = scalar_lea.hbm (!%p218_p9), %s1028_s10, 8  ;;  %p1034_p0 = scmp.lt.s32.totalorder (!%p218_p9), %s1028_s10, %s1777_s6 }
  0x13   : > { %v344_v0 = vld [vmem:[%s1772_s1 + $0x1e8] sm:$0xff]  ;;  %v343_v4 = vld [vmem:[%s1772_s1 + $0x1e0] sm:$0xff]  ;;  %s1785_s15 = smov (!%p249_p10, %s940_s15), 7  ;;  %vm389_vm0 = vcmask 523264   ;;  %v345_v41 = vld [vmem:[%s1772_s1 + $0x1f0] sm:$0xff]  ;;  %vm835_vm1 = vcmask 261120   ;;  %p1030_p11 = scmp.ne.s32.totalorder %s1028_s10, %s1029_s25 }
  0x14   : > { %v376_v1 = vld [vmem:[%s1772_s1 + $0x2e8] sm:$0xff]  ;;  %460 = vmatpush.msra.mxu2 %v344_v0  ;;  %v375_v5 = vld [vmem:[%s1772_s1 + $0x2e0] sm:$0xff]  ;;  %402 = vmatpush.msra.mxu0 %v343_v4  ;;  %s972_s13 = sshll.u32 %s1785_s15, 3  ;;  %v341_v45 = vld [vmem:[%s1772_s1 + $0x1d0] sm:$0xff]  ;;  %p1035_p1 = scmp.lt.s32.totalorder %s1033_s16, %s1029_s25 }
  0x15   : > { %v340_v2 = vld [vmem:[%s1772_s1 + $0x1c8] sm:$0xff]  ;;  %497 = vmatpush.msra.mxu3 %v376_v1  ;;  %439 = vmatpush.msra.mxu1 %v375_v5  ;;  %v339_v8 = vld [vmem:[%s1772_s1 + $0x1c0] sm:$0xff]  ;;  %s1218_s26 = scalar_lea.vmem %s1771_s0, %s972_s13  ;;  %v377_v48 = vld [vmem:[%s1772_s1 + $0x2f0] sm:$0xff]  ;;  %s245_s13 = sand.u32 1, %s1067_s22  }
  0x16   : > { %v372_v3 = vld [vmem:[%s1772_s1 + $0x2c8] sm:$0xff]  ;;  %461 = vmatpush.msra.mxu2 %v340_v2  ;;  %v371_v9 = vld [vmem:[%s1772_s1 + $0x2c0] sm:$0xff]  ;;  %403 = vmatpush.msra.mxu0 %v339_v8  ;;  %v1298_v46 = vld [vmem:[%s1218_s26 + $0x10] sm:$0xff]  ;;  %s939_s14 = sshll.u32 %s245_s13, 3  ;;  %p1031_p12 = pnand %p1030_p11, %p1150_p5 }
  0x17   : > { %v336_v6 = vld [vmem:[%s1772_s1 + $0x1a8] sm:$0xff]  ;;  %498 = vmatpush.msra.mxu3 %v372_v3  ;;  %440 = vmatpush.msra.mxu1 %v371_v9  ;;  %v335_v12 = vld [vmem:[%s1772_s1 + $0x1a0] sm:$0xff]  ;;  %v337_v51 = vld [vmem:[%s1772_s1 + $0x1b0] sm:$0xff]  ;;  %v264_v53 = vunpack.c.h.bf16 %v1298_v46  ;;  %s247_s15 = scalar_lea.vmem [#allocation2], %s939_s14  ;;  %p1036_p2 = por %p1035_p1, %p1034_p0 }
  0x18   : > { %v368_v7 = vld [vmem:[%s1772_s1 + $0x2a8] sm:$0xff]  ;;  %v367_v13 = vld [vmem:[%s1772_s1 + $0x2a0] sm:$0xff]  ;;  %462 = vmatpush.msra.mxu2 %v336_v6  ;;  %404 = vmatpush.msra.mxu0 %v335_v12  ;;  %v373_v54 = vld [vmem:[%s1772_s1 + $0x2d0] sm:$0xff]  ;;  %s873_s29 = sshll.u32 %s247_s15, 4  ;;  %p1032_p13 = pneg %p1031_p12  ;;  %s874_s29 = int_to_ptr.vmem [resolvable:$true] %s873_s29 }
  0x19   : > { %v332_v10 = vld [vmem:[%s1772_s1 + $0x188] sm:$0xff]  ;;  %499 = vmatpush.msra.mxu3 %v368_v7  ;;  %v331_v14 = vld [vmem:[%s1772_s1 + $0x180] sm:$0xff]  ;;  %441 = vmatpush.msra.mxu1 %v367_v13  ;;  %v333_v57 = vld [vmem:[%s1772_s1 + $0x190] sm:$0xff]  ;;  %v948_v62 = vadd.f32 -127.5, %v264_v53 }
  0x1a   : > { %v364_v11 = vld [vmem:[%s1772_s1 + $0x288] sm:$0xff]  ;;  %v363_v15 = vld [vmem:[%s1772_s1 + $0x280] sm:$0xff]  ;;  %463 = vmatpush.msra.mxu2 %v332_v10  ;;  %405 = vmatpush.msra.mxu0 %v331_v14  ;;  %v329_v60 = vld [vmem:[%s1772_s1 + $0x170] sm:$0xff]  ;;  %p1037_p3 = pnand %p1036_p2, %p1032_p13 }
  0x1b   : > { %v328_v16 = vld [vmem:[%s1772_s1 + $0x168] sm:$0xff]  ;;  %500 = vmatpush.msra.mxu3 %v364_v11  ;;  %v327_v18 = vld [vmem:[%s1772_s1 + $0x160] sm:$0xff]  ;;  %442 = vmatpush.msra.mxu1 %v363_v15  ;;  %v369_v0 = vld [vmem:[%s1772_s1 + $0x2b0] sm:$0xff]  ;;  %v1367_v8 = vmul.f32 0.0078125, %v948_v62 }
  0x1c   : > { %v360_v17 = vld [vmem:[%s1772_s1 + $0x268] sm:$0xff]  ;;  %v359_v19 = vld [vmem:[%s1772_s1 + $0x260] sm:$0xff]  ;;  %464 = vmatpush.msra.mxu2 %v328_v16  ;;  %406 = vmatpush.msra.mxu0 %v327_v18  ;;  %v1346_v1 = vld [vmem:[%s1218_s26 + $0x18] sm:$0xff] }
  0x1d   : > { %v324_v20 = vld [vmem:[%s1772_s1 + $0x148] sm:$0xff]  ;;  %501 = vmatpush.msra.mxu3 %v360_v17  ;;  %v323_v22 = vld [vmem:[%s1772_s1 + $0x140] sm:$0xff]  ;;  %443 = vmatpush.msra.mxu1 %v359_v19  ;;  %v325_v3 = vld [vmem:[%s1772_s1 + $0x150] sm:$0xff]  ;;  %v266_v11 = vunpack.c.h.bf16 %v1346_v1 }
  0x1e   : > { %v356_v21 = vld [vmem:[%s1772_s1 + $0x248] sm:$0xff]  ;;  %v355_v23 = vld [vmem:[%s1772_s1 + $0x240] sm:$0xff]  ;;  %465 = vmatpush.msra.mxu2 %v324_v20  ;;  %407 = vmatpush.msra.mxu0 %v323_v22  ;;  %v365_v5 = vld [vmem:[%s1772_s1 + $0x290] sm:$0xff] }
  0x1f   : > { %v1239_v24 = vld [vmem:[%s1218_s26] sm:$0xff]  ;;  %v320_v25 = vld [vmem:[%s1772_s1 + $0x128] sm:$0xff]  ;;  %502 = vmatpush.msra.mxu3 %v356_v21  ;;  %444 = vmatpush.msra.mxu1 %v355_v23  ;;  %v321_v9 = vld [vmem:[%s1772_s1 + $0x130] sm:$0xff]  ;;  %v950_v17 = vadd.f32 -127.5, %v266_v11 }
  0x20   : > { %v352_v26 = vld [vmem:[%s1772_s1 + $0x228] sm:$0xff]  ;;  %v260_v27 = vunpack.c.h.bf16 %v1239_v24  ;;  %v319_v28 = vld [vmem:[%s1772_s1 + $0x120] sm:$0xff]  ;;  %466 = vmatpush.msra.mxu2 %v320_v25  ;;  %v259_v52 = vunpack.c.l.bf16 %v1239_v24  ;;  %v317_v13 = vld [vmem:[%s1772_s1 + $0x110] sm:$0xff] }
  0x21   : > { %v351_v29 = vld [vmem:[%s1772_s1 + $0x220] sm:$0xff]  ;;  %v316_v30 = vld [vmem:[%s1772_s1 + $0x108] sm:$0xff]  ;;  %503 = vmatpush.msra.mxu3 %v352_v26  ;;  %408 = vmatpush.msra.mxu0 %v319_v28  ;;  %v313_v14 = vld [vmem:[%s1772_s1 + $0xf0] sm:$0xff]  ;;  %v1412_v25 = vmul.f32 0.0078125, %v950_v17  ;;  %v263_v28 = vunpack.c.l.bf16 %v1298_v46 }
  0x22   : > { %v348_v31 = vld [vmem:[%s1772_s1 + $0x208] sm:$0xff]  ;;  %v944_v32 = vadd.f32 -127.5, %v260_v27  ;;  %v315_v33 = vld [vmem:[%s1772_s1 + $0x100] sm:$0xff]  ;;  %445 = vmatpush.msra.mxu1 %v351_v29  ;;  %467 = vmatpush.msra.mxu2 %v316_v30  ;;  %v943_v61 = vadd.f32 -127.5, %v259_v52  ;;  %v346_v15 = vld [vmem:[%s1772_s1 + $0x1f8] sm:$0xff] }
  0x23   : > { %v1264_v34 = vld [vmem:[%s1218_s26 + $0x8] sm:$0xff]  ;;  %v347_v37 = vld [vmem:[%s1772_s1 + $0x200] sm:$0xff]  ;;  %504 = vmatpush.msra.mxu3 %v348_v31  ;;  %409 = vmatpush.msra.mxu0 %v315_v33  ;;  %v361_v18 = vld [vmem:[%s1772_s1 + $0x270] sm:$0xff]  ;;  %v947_v33 = vadd.f32 -127.5, %v263_v28  ;;  %s861_s26 = scalar_lea.sflag [#allocation3], %s245_s13 }
  0x24   : > { %v1266_v35 = vmul.f32 0.0078125, %v944_v32  ;;  %v312_v36 = vld [vmem:[%s1772_s1 + $0xe8] sm:$0xff]  ;;  %v262_v38 = vunpack.c.h.bf16 %v1264_v34  ;;  %v311_v39 = vld [vmem:[%s1772_s1 + $0xe0] sm:$0xff]  ;;  %446 = vmatpush.msra.mxu1 %v347_v37  ;;  %v1365_v7 = vmul.f32 0.0078125, %v943_v61  ;;  %v261_v10 = vunpack.c.l.bf16 %v1264_v34  ;;  %v378_v19 = vld [vmem:[%s1772_s1 + $0x2f8] sm:$0xff] }
  0x25   : > { %v308_v40 = vld [vmem:[%s1772_s1 + $0xc8] sm:$0xff]  ;;  %468 = vmatpush.msra.mxu2 %v312_v36  ;;  %v307_v43 = vld [vmem:[%s1772_s1 + $0xc0] sm:$0xff]  ;;  %410 = vmatpush.msra.mxu0 %v311_v39  ;;  %v309_v20 = vld [vmem:[%s1772_s1 + $0xd0] sm:$0xff] }
  0x26   : > { %955 = vmatmul.msk.f32.vlgmr.msra.gmra.mxu3 %vm389_vm0, %v1266_v35  ;;  %v946_v42 = vadd.f32 -127.5, %v262_v38  ;;  %951 = vmatmul.msk.f32.vlgmr.msra.gmra.mxu1 %vm389_vm0, %v1266_v35  ;;  %v304_v44 = vld [vmem:[%s1772_s1 + $0xa8] sm:$0xff]  ;;  %v303_v47 = vld [vmem:[%s1772_s1 + $0xa0] sm:$0xff]  ;;  %v945_v16 = vadd.f32 -127.5, %v261_v10  ;;  %v342_v21 = vld [vmem:[%s1772_s1 + $0x1d8] sm:$0xff] }
  0x27   : > { %469 = vmatpush.msra.mxu2 %v308_v40  ;;  %518 = vmatpush.msrb.mxu1 %v345_v41  ;;  %v300_v49 = vld [vmem:[%s1772_s1 + $0x88] sm:$0xff]  ;;  %v299_v55 = vld [vmem:[%s1772_s1 + $0x80] sm:$0xff]  ;;  %v357_v22 = vld [vmem:[%s1772_s1 + $0x250] sm:$0xff]  ;;  %v1457_v41 = vmul.f32 0.0078125, %v947_v33 }
  0x28   : > { %411 = vmatpush.msra.mxu0 %v307_v43  ;;  %v1309_v50 = vmul.f32 0.0078125, %v946_v42  ;;  %555 = vmatpush.msrb.mxu3 %v377_v48  ;;  %v296_v56 = vld [vmem:[%s1772_s1 + $0x68] sm:$0xff]  ;;  %v295_v58 = vld [vmem:[%s1772_s1 + $0x60] sm:$0xff]  ;;  %v374_v23 = vld [vmem:[%s1772_s1 + $0x2d8] sm:$0xff]  ;;  %v1410_v24 = vmul.f32 0.0078125, %v945_v16  ;;  %v265_v43 = vunpack.c.l.bf16 %v1346_v1 }
  0x29   : > { %470 = vmatpush.msra.mxu2 %v304_v44  ;;  %519 = vmatpush.msrb.mxu1 %v341_v45  ;;  %v292_v59 = vld [vmem:[%s1772_s1 + $0x48] sm:$0xff]  ;;  %v291_v63 = vld [vmem:[%s1772_s1 + $0x40] sm:$0xff]  ;;  %v305_v26 = vld [vmem:[%s1772_s1 + $0xb0] sm:$0xff] }
  0x2a   : > { %412 = vmatpush.msra.mxu0 %v303_v47  ;;  %556 = vmatpush.msrb.mxu3 %v373_v54  ;;  %v288_v2 = vld [vmem:[%s1772_s1 + $0x28] sm:$0xff]  ;;  %v287_v4 = vld [vmem:[%s1772_s1 + $0x20] sm:$0xff]  ;;  %v338_v27 = vld [vmem:[%s1772_s1 + $0x1b8] sm:$0xff]  ;;  %v949_v47 = vadd.f32 -127.5, %v265_v43 }
  0x2b   : > { %471 = vmatpush.msra.mxu2 %v300_v49  ;;  %520 = vmatpush.msrb.mxu1 %v337_v51  ;;  %v284_v6 = vld [vmem:[%s1772_s1 + $0x8] sm:$0xff]  ;;  %v283_v12 = vld [vmem:[%s1772_s1] sm:$0xff]  ;;  %v301_v29 = vld [vmem:[%s1772_s1 + $0x90] sm:$0xff] }
  0x2c   : > { %413 = vmatpush.msra.mxu0 %v299_v55  ;;  %557 = vmatpush.msrb.mxu3 %v369_v0  ;;  %v334_v30 = vld [vmem:[%s1772_s1 + $0x198] sm:$0xff]  ;;  %v297_v31 = vld [vmem:[%s1772_s1 + $0x70] sm:$0xff]  ;;  %v281_v53 = vmul.f32 0.0078125, %v949_v47  ;;  %v663_v0 = vld [vmem:[%s1774_s3 + $0x68] sm:$0xff] }
  0x2d   : > { %472 = vmatpush.msra.mxu2 %v296_v56  ;;  %521 = vmatpush.msrb.mxu1 %v333_v57  ;;  %v353_v32 = vld [vmem:[%s1772_s1 + $0x230] sm:$0xff]  ;;  %v330_v34 = vld [vmem:[%s1772_s1 + $0x178] sm:$0xff]  ;;  %v675_v10 = vld [vmem:[%s1774_s3 + $0xc8] sm:$0xff] }
  0x2e   : > { %956 = vmatmul.msk.f32.gmra.mxu3 %vm389_vm0, %v1309_v50  ;;  %952 = vmatmul.msk.f32.gmra.mxu1 %vm389_vm0, %v1309_v50  ;;  %v370_v36 = vld [vmem:[%s1772_s1 + $0x2b8] sm:$0xff]  ;;  %v293_v37 = vld [vmem:[%s1772_s1 + $0x50] sm:$0xff]  ;;  %v655_v17 = vld [vmem:[%s1774_s3 + $0x28] sm:$0xff] }
  0x2f   : > { %414 = vmatpush.msra.mxu0 %v295_v58  ;;  %473 = vmatpush.msra.mxu2 %v292_v59  ;;  %v349_v38 = vld [vmem:[%s1772_s1 + $0x210] sm:$0xff]  ;;  %v326_v39 = vld [vmem:[%s1772_s1 + $0x158] sm:$0xff]  ;;  %v667_v33 = vld [vmem:[%s1774_s3 + $0x88] sm:$0xff] }
  0x30   : > { %522 = vmatpush.msrb.mxu1 %v329_v60  ;;  %558 = vmatpush.msrb.mxu3 %v365_v5  ;;  %v366_v40 = vld [vmem:[%s1772_s1 + $0x298] sm:$0xff]  ;;  %v289_v42 = vld [vmem:[%s1772_s1 + $0x30] sm:$0xff]  ;;  %v686_v43 = vld [vmem:[%s1774_s3 + $0x120] sm:$0xff] }
  0x31   : > { %415 = vmatpush.msra.mxu0 %v291_v63  ;;  %474 = vmatpush.msra.mxu2 %v288_v2  ;;  %v322_v44 = vld [vmem:[%s1772_s1 + $0x138] sm:$0xff]  ;;  %v285_v45 = vld [vmem:[%s1772_s1 + $0x10] sm:$0xff] }
  0x32   : > { %523 = vmatpush.msrb.mxu1 %v325_v3  ;;  %559 = vmatpush.msrb.mxu3 %v361_v18  ;;  %v318_v46 = vld [vmem:[%s1772_s1 + $0x118] sm:$0xff]  ;;  %v664_v61 = vld [vmem:[%s1774_s3 + $0x70] sm:$0xff]  ;;  %v662_v3 = vld [vmem:[%s1774_s3 + $0x60] sm:$0xff] }
  0x33   : > { %416 = vmatpush.msra.mxu0 %v287_v4  ;;  %475 = vmatpush.msra.mxu2 %v284_v6  ;;  %v362_v48 = vld [vmem:[%s1772_s1 + $0x278] sm:$0xff]  ;;  %v680_v1 = vld [vmem:[%s1774_s3 + $0xf0] sm:$0xff]  ;;  %v679_v4 = vld [vmem:[%s1774_s3 + $0xe8] sm:$0xff] }
  0x34   : > { %524 = vmatpush.msrb.mxu1 %v321_v9  ;;  %476 = vmatmul.f32.vlgmr.msra.gmra.mxu2 %v1365_v7  ;;  %v314_v49 = vld [vmem:[%s1772_s1 + $0xf8] sm:$0xff]  ;;  %v660_v5 = vld [vmem:[%s1774_s3 + $0x50] sm:$0xff]  ;;  %v658_v9 = vld [vmem:[%s1774_s3 + $0x40] sm:$0xff] }
  0x35   : > { %417 = vmatpush.msra.mxu0 %v283_v12  ;;  %613 = vmatpush.msrb.mxu2 %v378_v19  ;;  %v358_v51 = vld [vmem:[%s1772_s1 + $0x258] sm:$0xff]  ;;  %v674_v12 = vld [vmem:[%s1774_s3 + $0xc0] sm:$0xff]  ;;  %v696_v16 = vld [vmem:[%s1774_s3 + $0x170] sm:$0xff] }
  0x36   : > { %957 = vmatmul.msk.f32.gmra.mxu3 %vm389_vm0, %v1367_v8  ;;  %525 = vmatpush.msrb.mxu1 %v317_v13  ;;  %v310_v52 = vld [vmem:[%s1772_s1 + $0xd8] sm:$0xff]  ;;  %v672_v18 = vld [vmem:[%s1774_s3 + $0xb0] sm:$0xff]  ;;  %v695_v19 = vld [vmem:[%s1774_s3 + $0x168] sm:$0xff] }
  0x37   : > { %418 = vmatmul.f32.vlgmr.msra.gmra.mxu0 %v1365_v7  ;;  %953 = vmatmul.msk.f32.gmra.mxu1 %vm389_vm0, %v1367_v8  ;;  %v354_v54 = vld [vmem:[%s1772_s1 + $0x238] sm:$0xff]  ;;  %v692_v28 = vld [vmem:[%s1774_s3 + $0x150] sm:$0xff] }
  0x38   : > { %526 = vmatpush.msrb.mxu1 %v313_v14  ;;  %576 = vmatpush.msrb.mxu0 %v346_v15  ;;  %v306_v55 = vld [vmem:[%s1772_s1 + $0xb8] sm:$0xff]  ;;  %v656_v14 = vld [vmem:[%s1774_s3 + $0x30] sm:$0xff] }
  0x39   : > { %560 = vmatpush.msrb.mxu3 %v357_v22  ;;  %614 = vmatpush.msrb.mxu2 %v374_v23  ;;  %v350_v56 = vld [vmem:[%s1772_s1 + $0x218] sm:$0xff]  ;;  %v694_v22 = vld [vmem:[%s1774_s3 + $0x160] sm:$0xff] }
  0x3a   : > { %527 = vmatpush.msrb.mxu1 %v309_v20  ;;  %577 = vmatpush.msrb.mxu0 %v342_v21  ;;  %v302_v57 = vld [vmem:[%s1772_s1 + $0x98] sm:$0xff]  ;;  %v654_v20 = vld [vmem:[%s1774_s3 + $0x20] sm:$0xff]  ;;  %v671_v21 = vld [vmem:[%s1774_s3 + $0xa8] sm:$0xff] }
  0x3b   : > { %561 = vmatpush.msrb.mxu3 %v353_v32  ;;  %615 = vmatpush.msrb.mxu2 %v370_v36  ;;  %v298_v58 = vld [vmem:[%s1772_s1 + $0x78] sm:$0xff]  ;;  %v650_v32 = vld [vmem:[%s1774_s3] sm:$0xff] }
  0x3c   : > { %528 = vmatpush.msrb.mxu1 %v305_v26  ;;  %578 = vmatpush.msrb.mxu0 %v338_v27  ;;  %v294_v59 = vld [vmem:[%s1772_s1 + $0x58] sm:$0xff]  ;;  %v652_v26 = vld [vmem:[%s1774_s3 + $0x10] sm:$0xff]  ;;  %v666_v36 = vld [vmem:[%s1774_s3 + $0x80] sm:$0xff] }
  0x3d   : > { %479 = vmatmul.f32.gmra.mxu2 %v1410_v24  ;;  %562 = vmatpush.msrb.mxu3 %v349_v38  ;;  %v665_v60 = vld [vmem:[%s1774_s3 + $0x78] sm:$0xff] }
  0x3e   : > { %958 = vmatmul.msk.f32.gmra.mxu3 %vm389_vm0, %v1412_v25  ;;  %529 = vmatpush.msrb.mxu1 %v301_v29  ;;  %v681_v62 = vld [vmem:[%s1774_s3 + $0xf8] sm:$0xff]  ;;  %v651_v29 = vld [vmem:[%s1774_s3 + $0x8] sm:$0xff] }
  0x3f   : > { %579 = vmatpush.msrb.mxu0 %v334_v30  ;;  %954 = vmatmul.msk.f32.gmra.mxu1 %vm389_vm0, %v1412_v25  ;;  %v290_v63 = vld [vmem:[%s1772_s1 + $0x38] sm:$0xff]  ;;  %v668_v30 = vld [vmem:[%s1774_s3 + $0x90] sm:$0xff] }
  0x40   : > { %421 = vmatmul.f32.gmra.mxu0 %v1410_v24  ;;  %530 = vmatpush.msrb.mxu1 %v297_v31  ;;  %v286_v2 = vld [vmem:[%s1772_s1 + $0x18] sm:$0xff]  ;;  %v691_v31 = vld [vmem:[%s1774_s3 + $0x148] sm:$0xff] }
  0x41   : > { %580 = vmatpush.msrb.mxu0 %v330_v34  ;;  %616 = vmatpush.msrb.mxu2 %v366_v40  ;;  %v677_v6 = vld [vmem:[%s1774_s3 + $0xd8] sm:$0xff]  ;;  %v690_v34 = vld [vmem:[%s1774_s3 + $0x140] sm:$0xff]  ;;  %v712_v40 = vld [vmem:[%s1774_s3 + $0x1f0] sm:$0xff] }
  0x42   : > { %531 = vmatpush.msrb.mxu1 %v293_v37  ;;  %743 = vmatpush.msra.mxu3 %v681_v62  ;;  %v657_v11 = vld [vmem:[%s1774_s3 + $0x38] sm:$0xff]  ;;  %v703_v62 = vld [vmem:[%s1774_s3 + $0x1a8] sm:$0xff] }
  0x43   : > { %581 = vmatpush.msrb.mxu0 %v326_v39  ;;  %617 = vmatpush.msrb.mxu2 %v362_v48  ;;  %v697_v13 = vld [vmem:[%s1774_s3 + $0x178] sm:$0xff]  ;;  %v688_v39 = vld [vmem:[%s1774_s3 + $0x130] sm:$0xff] }
  0x44   : > { %532 = vmatpush.msrb.mxu1 %v289_v42  ;;  %744 = vmatpush.msra.mxu3 %v680_v1  ;;  %v673_v15 = vld [vmem:[%s1774_s3 + $0xb8] sm:$0xff]  ;;  %v711_v42 = vld [vmem:[%s1774_s3 + $0x1e8] sm:$0xff]  ;;  %v684_v48 = vld [vmem:[%s1774_s3 + $0x110] sm:$0xff] }
  0x45   : > { %482 = vmatmul.f32.gmra.mxu2 %v1457_v41  ;;  %582 = vmatpush.msrb.mxu0 %v322_v44  ;;  %v653_v23 = vld [vmem:[%s1774_s3 + $0x18] sm:$0xff]  ;;  %v710_v44 = vld [vmem:[%s1774_s3 + $0x1e0] sm:$0xff] }
  0x46   : > { %959 = vmatmul.msk.f32.vlgmr.msrb.gmra.mxu3 %vm389_vm0, %v1266_v35  ;;  %533 = vmatpush.msrb.mxu1 %v285_v45  ;;  %v669_v27 = vld [vmem:[%s1774_s3 + $0x98] sm:$0xff] }
  0x47   : > { %534 = vmatmul.f32.vlgmr.msrb.gmra.mxu1 %v1365_v7  ;;  %583 = vmatpush.msrb.mxu0 %v318_v46  ;;  %v689_v37 = vld [vmem:[%s1774_s3 + $0x138] sm:$0xff] }
  0x48   : > { %424 = vmatmul.f32.gmra.mxu0 %v1457_v41  ;;  %618 = vmatpush.msrb.mxu2 %v358_v51  ;;  %v713_v38 = vld [vmem:[%s1774_s3 + $0x1f8] sm:$0xff] }
  0x49   : > { %584 = vmatpush.msrb.mxu0 %v314_v49  ;;  %714 = vmatpush.msra.mxu1 %v665_v60  ;;  %v685_v46 = vld [vmem:[%s1774_s3 + $0x118] sm:$0xff]  ;;  %v708_v49 = vld [vmem:[%s1774_s3 + $0x1d0] sm:$0xff] }
  0x4a   : > { %619 = vmatpush.msrb.mxu2 %v354_v54  ;;  %745 = vmatpush.msra.mxu3 %v679_v4  ;;  %v709_v47 = vld [vmem:[%s1774_s3 + $0x1d8] sm:$0xff]  ;;  %v682_v54 = vld [vmem:[%s1774_s3 + $0x100] sm:$0xff] }
  0x4b   : > { %585 = vmatpush.msrb.mxu0 %v310_v52  ;;  %715 = vmatpush.msra.mxu1 %v664_v61  ;;  %v683_v52 = vld [vmem:[%s1774_s3 + $0x108] sm:$0xff]  ;;  %v701_v4 = vld [vmem:[%s1774_s3 + $0x198] sm:$0xff] }
  0x4c   : > { %620 = vmatpush.msrb.mxu2 %v350_v56 }
  0x4d   : > { %485 = vmatmul.f32.gmra.mxu2 %v281_v53  ;;  %586 = vmatpush.msrb.mxu0 %v306_v55  ;;  %v706_v55 = vld [vmem:[%s1774_s3 + $0x1c0] sm:$0xff] }
  0x4e   : > { %960 = vmatmul.msk.f32.gmra.mxu3 %vm389_vm0, %v1309_v50  ;;  %716 = vmatpush.msra.mxu1 %v663_v0 }
  0x4f   : > { %537 = vmatmul.f32.gmra.mxu1 %v1410_v24  ;;  %587 = vmatpush.msrb.mxu0 %v302_v57  ;;  %v705_v57 = vld [vmem:[%s1774_s3 + $0x1b8] sm:$0xff] }
  0x50   : > { %427 = vmatmul.f32.gmra.mxu0 %v281_v53  ;;  %717 = vmatpush.msra.mxu1 %v662_v3 }
  0x51   : > { %588 = vmatpush.msrb.mxu0 %v298_v58  ;;  %801 = vmatpush.msra.mxu2 %v713_v38  ;;  %v1706_v58 = vld [vmem:[%s1773_s2] sm:$0xf] }
  0x52   : > { %v381_v61 = vperm.slane %v1706_v58, 0  ;;  %v382_v3 = vperm.slane %v1706_v58, 1 }
  0x53   : > { %589 = vmatpush.msrb.mxu0 %v294_v59  ;;  %802 = vmatpush.msra.mxu2 %v712_v40  ;;  %v704_v59 = vld [vmem:[%s1774_s3 + $0x1b0] sm:$0xff] }
  0x55   : > { %963 = vmatmul.msk.f32.vlgmr.msrb.gmra.mxu2 %vm389_vm0, %v1266_v35  ;;  %590 = vmatpush.msrb.mxu0 %v290_v63  ;;  %v661_v35 = vld [vmem:[%s1774_s3 + $0x58] sm:$0xff]  ;;  %v702_v63 = vld [vmem:[%s1774_s3 + $0x1a0] sm:$0xff] }
  0x56   : > { %961 = vmatmul.msk.f32.gmra.mxu3 %vm389_vm0, %v1367_v8  ;;  %718 = vmatpush.msra.mxu1 %v661_v35 }
  0x57   : > { %540 = vmatmul.f32.gmra.mxu1 %v1457_v41  ;;  %591 = vmatpush.msrb.mxu0 %v286_v2 }
  0x58   : > { %592 = vmatmul.f32.vlgmr.msrb.gmra.mxu0 %v1365_v7  ;;  %719 = vmatpush.msra.mxu1 %v660_v5  ;;  %v659_v7 = vld [vmem:[%s1774_s3 + $0x48] sm:$0xff] }
  0x59   : > { %772 = vmatpush.msra.mxu0 %v697_v13  ;;  %803 = vmatpush.msra.mxu2 %v711_v42 }
  0x5a   : > { %720 = vmatpush.msra.mxu1 %v659_v7 }
  0x5b   : > { %773 = vmatpush.msra.mxu0 %v696_v16  ;;  %804 = vmatpush.msra.mxu2 %v710_v44 }
  0x5c   : > { %721 = vmatpush.msra.mxu1 %v658_v9  ;;  %v699_v9 = vld [vmem:[%s1774_s3 + $0x188] sm:$0xff] }
  0x5d   : > { %964 = vmatmul.msk.f32.gmra.mxu2 %vm389_vm0, %v1309_v50  ;;  %v678_v50 = vld [vmem:[%s1774_s3 + $0xe0] sm:$0xff]  ;;  %774 = vmatpush.msra.mxu0 %v695_v19 }
  0x5e   : > { %962 = vmatmul.msk.f32.gmra.mxu3 %vm389_vm0, %v1412_v25  ;;  %722 = vmatpush.msra.mxu1 %v657_v11  ;;  %v698_v11 = vld [vmem:[%s1774_s3 + $0x180] sm:$0xff] }
  0x5f   : > { %543 = vmatmul.f32.gmra.mxu1 %v281_v53  ;;  %746 = vmatpush.msra.mxu3 %v678_v50  ;;  %v700_v50 = vld [vmem:[%s1774_s3 + $0x190] sm:$0xff] }
  0x60   : > { %595 = vmatmul.f32.gmra.mxu0 %v1410_v24  ;;  %723 = vmatpush.msra.mxu1 %v656_v14  ;;  %v670_v24 = vld [vmem:[%s1774_s3 + $0xa0] sm:$0xff] }
  0x61   : > { %747 = vmatpush.msra.mxu3 %v677_v6  ;;  %775 = vmatpush.msra.mxu0 %v694_v22 }
  0x62   : > { %724 = vmatpush.msra.mxu1 %v655_v17  ;;  %805 = vmatpush.msra.mxu2 %v709_v47 }
  0x64   : > { %725 = vmatpush.msra.mxu1 %v654_v20  ;;  %806 = vmatpush.msra.mxu2 %v708_v49  ;;  %v384_v49 = vperm.slane %v1706_v58, 3 }
  0x65   : > { %965 = vmatmul.msk.f32.gmra.mxu2 %vm389_vm0, %v1367_v8  ;;  %v676_v8 = vld [vmem:[%s1774_s3 + $0xd0] sm:$0xff] }
  0x66   : > { %748 = vmatpush.msra.mxu3 %v676_v8  ;;  %726 = vmatpush.msra.mxu1 %v653_v23 }
  0x68   : > { %598 = vmatmul.f32.gmra.mxu0 %v1457_v41  ;;  %749 = vmatpush.msra.mxu3 %v675_v10  ;;  %v687_v41 = vld [vmem:[%s1774_s3 + $0x128] sm:$0xff] }
  0x69   : > { %727 = vmatpush.msra.mxu1 %v652_v26 }
  0x6a   : > { %750 = vmatpush.msra.mxu3 %v674_v12 }
  0x6b   : > { %728 = vmatpush.msra.mxu1 %v651_v29 }
  0x6c   : > { %751 = vmatpush.msra.mxu3 %v673_v15 }
  0x6d   : > { %966 = vmatmul.msk.f32.gmra.mxu2 %vm389_vm0, %v1412_v25  ;;  %v693_v25 = vld [vmem:[%s1774_s3 + $0x158] sm:$0xff]  ;;  %729 = vmatpush.msra.mxu1 %v650_v32 }
  0x6e   : > { %752 = vmatpush.msra.mxu3 %v672_v18  ;;  %776 = vmatpush.msra.mxu0 %v693_v25 }
  0x70   : > { %601 = vmatmul.f32.gmra.mxu0 %v281_v53  ;;  %753 = vmatpush.msra.mxu3 %v671_v21  ;;  %v707_v53 = vld [vmem:[%s1774_s3 + $0x1c8] sm:$0xff]  ;;  %v383_v21 = vperm.slane %v1706_v58, 2 }
  0x71   : > { %777 = vmatpush.msra.mxu0 %v692_v28  ;;  %807 = vmatpush.msra.mxu2 %v707_v53 }
  0x72   : > { %754 = vmatpush.msra.mxu3 %v670_v24 }
  0x73   : > { %778 = vmatpush.msra.mxu0 %v691_v31  ;;  %808 = vmatpush.msra.mxu2 %v706_v55 }
  0x74   : > { %755 = vmatpush.msra.mxu3 %v669_v27 }
  0x75   : > { %779 = vmatpush.msra.mxu0 %v690_v34  ;;  %809 = vmatpush.msra.mxu2 %v705_v57 }
  0x76   : > { %756 = vmatpush.msra.mxu3 %v668_v30 }
  0x77   : > { %780 = vmatpush.msra.mxu0 %v689_v37  ;;  %810 = vmatpush.msra.mxu2 %v704_v59 }
  0x78   : > { %757 = vmatpush.msra.mxu3 %v667_v33 }
  0x79   : > { %781 = vmatpush.msra.mxu0 %v688_v39  ;;  %811 = vmatpush.msra.mxu2 %v703_v62 }
  0x7a   : > { %758 = vmatpush.msra.mxu3 %v666_v36 }
  0x7b   : > { %782 = vmatpush.msra.mxu0 %v687_v41  ;;  %812 = vmatpush.msra.mxu2 %v702_v63 }
  0x7d   : > { %783 = vmatpush.msra.mxu0 %v686_v43  ;;  %813 = vmatpush.msra.mxu2 %v701_v4 }
  0x7f   : > { %784 = vmatpush.msra.mxu0 %v685_v46  ;;  %814 = vmatpush.msra.mxu2 %v700_v50 }
  0x81   : > { %785 = vmatpush.msra.mxu0 %v684_v48  ;;  %815 = vmatpush.msra.mxu2 %v699_v9 }
  0x83   : > { %786 = vmatpush.msra.mxu0 %v683_v52  ;;  %816 = vmatpush.msra.mxu2 %v698_v11 }
  0x85   : > { %787 = vmatpush.msra.mxu0 %v682_v54 }
  0xa3   : > { %v448_v45 = vpop.f32.mrf.mxu1 }
  0xa9   : > { %v506_v51 = vpop.f32.mrf.mxu3 }
  0xab   : > { %v451_v56 = vpop.f32.mrf.mxu1 }
  0xb1   : > { %v509_v60 = vpop.f32.mrf.mxu3 }
  0xb4   : > { %v419_v0 = vpop.f32.mrf.mxu0  ;;  %v454_v1 = vpop.f32.mrf.mxu1 }
  0xb5   : > { %v420_v2 = vadd.f32 %v419_v0, %v381_v61 }
  0xb7   : > { %v449_v35 = vadd.f32 %v448_v45, %v420_v2  ;;  %v477_v5 = vpop.f32.mrf.mxu2 }
  0xb8   : > { %v478_v8 = vadd.f32 %v477_v5, %v382_v3 }
  0xb9   : > { %v512_v6 = vpop.f32.mrf.mxu3  ;;  %v634_v7 = vmax.f32 %v449_v35, 0.0 }
  0xba   : > { %v507_v10 = vadd.f32 %v506_v51, %v478_v8 }
  0xbb   : > { %730 = vmatmul.f32.vlgmr.msra.gmra.mxu1 %v634_v7 }
  0xbc   : > { %v457_v13 = vpop.f32.mrf.mxu1  ;;  %v635_v14 = vmax.f32 %v507_v10, 0.0 }
  0xbd   : > { %v422_v12 = vpop.f32.mrf.mxu0 }
  0xbe   : > { %v423_v15 = vadd.f32 %v422_v12, %v381_v61  ;;  %759 = vmatmul.f32.vlgmr.msra.gmra.mxu3 %v635_v14 }
  0xc0   : > { %v452_v16 = vadd.f32 %v451_v56, %v423_v15  ;;  %v480_v17 = vpop.f32.mrf.mxu2 }
  0xc1   : > { %v515_v18 = vpop.f32.mrf.mxu3  ;;  %v481_v19 = vadd.f32 %v480_v17, %v382_v3 }
  0xc2   : > { %v638_v20 = vmax.f32 %v452_v16, 0.0 }
  0xc3   : > { %v510_v22 = vadd.f32 %v509_v60, %v481_v19 }
  0xc4   : > { %733 = vmatmul.f32.gmra.mxu1 %v638_v20  ;;  %v535_v24 = vpop.f32.mrf.mxu1 }
  0xc5   : > { %v425_v23 = vpop.f32.mrf.mxu0  ;;  %v536_v26 = vadd.f32 %v535_v24, %v383_v21  ;;  %v639_v27 = vmax.f32 %v510_v22, 0.0 }
  0xc6   : > { %v426_v25 = vadd.f32 %v425_v23, %v381_v61 }
  0xc7   : > { %762 = vmatmul.f32.gmra.mxu3 %v639_v27 }
  0xc8   : > { %v455_v28 = vadd.f32 %v454_v1, %v426_v25  ;;  %v483_v29 = vpop.f32.mrf.mxu2 }
  0xc9   : > { %v564_v30 = vpop.f32.mrf.mxu3  ;;  %v484_v31 = vadd.f32 %v483_v29, %v382_v3 }
  0xca   : > { %v565_v32 = vadd.f32 %v564_v30, %v536_v26  ;;  %v642_v33 = vmax.f32 %v455_v28, 0.0 }
  0xcb   : > { %v513_v36 = vadd.f32 %v512_v6, %v484_v31 }
  0xcc   : > { %v636_v34 = vmax.f32 %v565_v32, 0.0  ;;  %736 = vmatmul.f32.gmra.mxu1 %v642_v33  ;;  %v538_v38 = vpop.f32.mrf.mxu1 }
  0xcd   : > { %v428_v37 = vpop.f32.mrf.mxu0  ;;  %v539_v40 = vadd.f32 %v538_v38, %v383_v21  ;;  %v643_v41 = vmax.f32 %v513_v36, 0.0 }
  0xce   : > { %788 = vmatmul.f32.vlgmr.msra.gmra.mxu0 %v636_v34  ;;  %v429_v39 = vadd.f32 %v428_v37, %v381_v61 }
  0xcf   : > { %765 = vmatmul.f32.gmra.mxu3 %v643_v41 }
  0xd0   : > { %v458_v42 = vadd.f32 %v457_v13, %v429_v39  ;;  %v486_v43 = vpop.f32.mrf.mxu2 }
  0xd1   : > { %v567_v44 = vpop.f32.mrf.mxu3  ;;  %v487_v45 = vadd.f32 %v486_v43, %v382_v3 }
  0xd2   : > { %v568_v46 = vadd.f32 %v567_v44, %v539_v40  ;;  %v646_v47 = vmax.f32 %v458_v42, 0.0 }
  0xd3   : > { %v516_v51 = vadd.f32 %v515_v18, %v487_v45 }
  0xd4   : > { %v640_v48 = vmax.f32 %v568_v46, 0.0  ;;  %739 = vmatmul.f32.gmra.mxu1 %v646_v47  ;;  %v541_v52 = vpop.f32.mrf.mxu1  ;;  %v830_v46 = vld [vmem:[%s1776_s5] sm:$0xff] }
  0xd5   : > { %v542_v53 = vadd.f32 %v541_v52, %v383_v21  ;;  %v647_v54 = vmax.f32 %v516_v51, 0.0  ;;  %v593_v55 = vpop.f32.mrf.mxu0  ;;  %v1012_v47 = vld [vmem:[%s1775_s4] ss:$0 sm:$0xff] }
  0xd6   : > { %791 = vmatmul.f32.gmra.mxu0 %v640_v48  ;;  %v594_v56 = vadd.f32 %v593_v55, %v384_v49 }
  0xd7   : > { %768 = vmatmul.f32.gmra.mxu3 %v647_v54 }
  0xd8   : > { %v622_v59 = vpop.f32.mrf.mxu2 }
  0xd9   : > { %v570_v57 = vpop.f32.mrf.mxu3  ;;  %v623_v61 = vadd.f32 %v622_v59, %v594_v56 }
  0xda   : > { %v571_v60 = vadd.f32 %v570_v57, %v542_v53 }
  0xdb   : > { %v637_v63 = vmax.f32 %v623_v61, 0.0 }
  0xdc   : > { %v644_v62 = vmax.f32 %v571_v60, 0.0  ;;  %v544_v0 = vpop.f32.mrf.mxu1 }
  0xdd   : > { %817 = vmatmul.f32.vlgmr.msra.gmra.mxu2 %v637_v63  ;;  %v545_v1 = vadd.f32 %v544_v0, %v383_v21  ;;  %v596_v2 = vpop.f32.mrf.mxu0 }
  0xde   : > { %794 = vmatmul.f32.gmra.mxu0 %v644_v62  ;;  %v597_v58 = vadd.f32 %v596_v2, %v384_v49 }
  0xe0   : > { %v625_v4 = vpop.f32.mrf.mxu2 }
  0xe1   : > { %v573_v3 = vpop.f32.mrf.mxu3  ;;  %v626_v50 = vadd.f32 %v625_v4, %v597_v58 }
  0xe2   : > { %v574_v35 = vadd.f32 %v573_v3, %v545_v1 }
  0xe3   : > { %v641_v6 = vmax.f32 %v626_v50, 0.0 }
  0xe4   : > { %v648_v5 = vmax.f32 %v574_v35, 0.0 }
  0xe5   : > { %820 = vmatmul.f32.gmra.mxu2 %v641_v6  ;;  %v599_v7 = vpop.f32.mrf.mxu0 }
  0xe6   : > { %797 = vmatmul.f32.gmra.mxu0 %v648_v5  ;;  %v600_v8 = vadd.f32 %v599_v7, %v384_v49 }
  0xe8   : > { %v628_v9 = vpop.f32.mrf.mxu2 }
  0xe9   : > { %v629_v10 = vadd.f32 %v628_v9, %v600_v8 }
  0xeb   : > { %v645_v11 = vmax.f32 %v629_v10, 0.0 }
  0xed   : > { %823 = vmatmul.f32.gmra.mxu2 %v645_v11  ;;  %v602_v12 = vpop.f32.mrf.mxu0 }
  0xee   : > { %v603_v13 = vadd.f32 %v602_v12, %v384_v49 }
  0xf0   : > { %v631_v14 = vpop.f32.mrf.mxu2 }
  0xf1   : > { %v632_v15 = vadd.f32 %v631_v14, %v603_v13 }
  0xf3   : > { %v649_v16 = vmax.f32 %v632_v15, 0.0 }
  0xf5   : > { %826 = vmatmul.f32.gmra.mxu2 %v649_v16 }
 0x138   : > { %v731_v18 = vpop.f32.mrf.mxu1 }
 0x141   : > { %v760_v17 = vpop.f32.mrf.mxu3  ;;  %v734_v21 = vpop.f32.mrf.mxu1 }
 0x142   : > { %v761_v40 = vadd.f32 %v760_v17, %v731_v18 }
 0x149   : > { %v737_v26 = vpop.f32.mrf.mxu1 }
 0x14a   : > { %v763_v20 = vpop.f32.mrf.mxu3 }
 0x14b   : > { %v789_v19 = vpop.f32.mrf.mxu0  ;;  %v764_v37 = vadd.f32 %v763_v20, %v734_v21 }
 0x14c   : > { %v790_v43 = vadd.f32 %v789_v19, %v761_v40 }
 0x151   : > { %v740_v30 = vpop.f32.mrf.mxu1 }
 0x152   : > { %v766_v24 = vpop.f32.mrf.mxu3 }
 0x153   : > { %v792_v22 = vpop.f32.mrf.mxu0  ;;  %v767_v33 = vadd.f32 %v766_v24, %v737_v26 }
 0x154   : > { %v793_v41 = vadd.f32 %v792_v22, %v764_v37 }
 0x15a   : > { %v769_v29 = vpop.f32.mrf.mxu3 }
 0x15b   : > { %v795_v27 = vpop.f32.mrf.mxu0  ;;  %v770_v32 = vadd.f32 %v769_v29, %v740_v30 }
 0x15c   : > { %v796_v38 = vadd.f32 %v795_v27, %v767_v33 }
 0x160   : > { %v818_v23 = vpop.f32.mrf.mxu2 }
 0x161   : > { %v819_v45 = vadd.f32 %v818_v23, %v790_v43 }
 0x163   : > { %v798_v31 = vpop.f32.mrf.mxu0 }
 0x164   : > { %v799_v34 = vadd.f32 %v798_v31, %v770_v32 }
 0x168   : > { %v821_v25 = vpop.f32.mrf.mxu2 }
 0x169   : > { %v822_v44 = vadd.f32 %v821_v25, %v793_v41 }
 0x170   : > { %v824_v28 = vpop.f32.mrf.mxu2 }
 0x171   : > { %v825_v42 = vadd.f32 %v824_v28, %v796_v38 }
 0x178   : > { %v827_v36 = vpop.f32.mrf.mxu2 }
 0x179   : > { %v828_v39 = vadd.f32 %v827_v36, %v799_v34 }
 0x17b   : > { %851 = vmatpush.msrb.mxu1 %v828_v39 }
 0x17d   : > { %852 = vmatpush.msrb.mxu1 %v825_v42 }
 0x17f   : > { %853 = vmatpush.msrb.mxu1 %v822_v44 }
 0x181   : > { %854 = vmatpush.msrb.mxu1 %v819_v45 }
 0x182   : > { %967 = vmatmul.msk.f32.vlgmr.msrb.gmra.mxu1 %vm835_vm1, %v830_v46 }
 0x1ff   : > { %v856_v48 = vpop.f32.mrf.mxu1 }
 0x200   : > { %v857_v49 = vadd.f32 %v1012_v47, %v856_v48 }
 0x202   : > { %859 = vst [vmem:[%s247_s15] sm:$0xff] %v857_v49 }
 0x203   : > { %1040 = shalt.err (!%p1037_p3)
}
 0x204   : > { %973 = dma.vmem_to_hbm [thread:$0]  (%p1150_p5), %s874_s29, 128, %s876_s9, %s861_s26  }
 0x205 PF: > { %p979_p4 = scmp.ge.s32.totalorder %s1075_s24, 2  ;;  %s887_s13 = sand.u32 1, %s1063_s21  }
 0x206   : > { %s888_s18 = scalar_lea.sflag [#allocation3], %s887_s13 }
 0x207   : > { %p976_p7 = pnand %p979_p4, %p1154_p6 }
 0x209   : > { %p977_p8 = pneg %p976_p7 }
 0x20b   : > { %1058 = dma.done.wait (%p977_p8), %s888_s18, 128  }
 0x20c   : > { %1060 = vsyncadd (%p977_p8), %s888_s18, 4294967168  ;;  %p16_p9 = scmp.ge.s32.totalorder %s1137_s27, 4   ;;  %s1780_s21 = smov %s1067_s22 }
 0x20d   : > { %s1781_s22 = smov %s1071_s23  ;;  %s1782_s23 = smov %s1148_s30 }
 0x20e   : > { %s1783_s24 = smov %s1137_s27  ;;  %18 = sbr.rel (!%p16_p9) target bundleno = 3 (0x3), region = 79 }
 0x213   :  { %894 = vsyncpa [#allocation3], 1 }
 0x214   :  { %896 = vsyncpa [#allocation3 + $0x1], 1 }

</bundles_post_ra>
